<compile_context>
chip_gen: v6e
topology: v6e:2x2x1
jax: 0.10.0
libtpu: 0.0.40
codegen_flags: <defaults>
</compile_context>

<pallas_src>
import functools

import jax
import jax.numpy as jnp
import numpy as np
from jax.experimental import pallas as pl
from jax.experimental.pallas import tpu as pltpu

_NEG_BIG = -1e30  # bias for padded softmax lanes: exp(-1e30 - m) == 0.0 in f32


def _round_up(x, m):
    return ((x + m - 1) // m) * m


def policy_net_kernel(x_ref, w1_ref, b1_ref, w2_ref, b2_ref, w3_ref, b3_ref, o_ref):
    # x tile (TB, in) arrives f32; cast to bf16 for the MXU (weights already bf16).
    x = x_ref[...].astype(jnp.bfloat16)

    h1 = jnp.dot(x, w1_ref[...], preferred_element_type=jnp.float32) + b1_ref[...]
    h1 = jnp.maximum(h1, 0.0).astype(jnp.bfloat16)

    h2 = jnp.dot(h1, w2_ref[...], preferred_element_type=jnp.float32) + b2_ref[...]
    h2 = jnp.maximum(h2, 0.0).astype(jnp.bfloat16)

    logits = jnp.dot(h2, w3_ref[...], preferred_element_type=jnp.float32) + b3_ref[...]

    # Numerically-stable softmax over the lane-dense (padded) last axis.
    # Exact f32 divide for the normalization so rows sum to 1 at f32 accuracy
    # (approx EUP reciprocal previously gave ~2e-3 row-sum error).
    m = jnp.max(logits, axis=-1, keepdims=True)
    e = jnp.exp(logits - m)
    denom = jnp.sum(e, axis=-1, keepdims=True)
    o_ref[...] = (e / denom).astype(o_ref.dtype)


@functools.partial(jax.jit, static_argnames=("block_batch",))
def policy_network_forward(x, params, *, block_batch=512):
    """x: (batch, input_dim) float32. params: (in,out) weights + (1,out) biases."""
    batch, input_dim = x.shape
    hidden = params["w1"].shape[1]
    output_dim = params["w3"].shape[1]

    # bf16 matmul operands; biases stay f32 for the f32 accumulate/elementwise path.
    w1 = params["w1"].astype(jnp.bfloat16)
    w2 = params["w2"].astype(jnp.bfloat16)
    b1 = params["b1"].astype(jnp.float32)
    b2 = params["b2"].astype(jnp.float32)

    # Lane-dense output: pad fc3 out-dim up to a multiple of 128 lanes; padded
    # lanes get zero weights and a huge negative bias so softmax ignores them.
    out_pad = _round_up(output_dim, 128)
    w3 = jnp.pad(params["w3"], ((0, 0), (0, out_pad - output_dim))).astype(jnp.bfloat16)
    b3 = jnp.pad(params["b3"].astype(jnp.float32),
                 ((0, 0), (0, out_pad - output_dim)),
                 constant_values=_NEG_BIG)

    # Batch tiling: TB rows per grid step (multiple of 8 sublanes); pad batch
    # up to a multiple of TB so every tile is full. 512 rows keeps the working
    # set tiny (<1 MiB even double-buffered) while reaching the large-tile
    # HBM-bandwidth regime.
    tb = min(block_batch, _round_up(batch, 8))
    padded_batch = _round_up(batch, tb)
    if padded_batch != batch:
        x = jnp.pad(x, ((0, padded_batch - batch), (0, 0)))

    grid = (padded_batch // tb,)
    const = lambda i: (0, 0)  # weights/biases resident across all grid steps

    flops = 2 * padded_batch * (input_dim * hidden + hidden * hidden + hidden * out_pad)
    bytes_accessed = (
        padded_batch * (input_dim + out_pad) * 4
        + (w1.size + w2.size + w3.size) * 2
        + (b1.size + b2.size + b3.size) * 4
    )
    cost = pl.CostEstimate(
        flops=flops,
        transcendentals=padded_batch * out_pad,
        bytes_accessed=bytes_accessed,
    )

    out = pl.pallas_call(
        policy_net_kernel,
        out_shape=jax.ShapeDtypeStruct((padded_batch, out_pad), jnp.float32),
        grid_spec=pltpu.PrefetchScalarGridSpec(
            num_scalar_prefetch=0,
            grid=grid,
            in_specs=[
                pl.BlockSpec((tb, input_dim), lambda i: (i, 0)),   # x: tiled over batch
                pl.BlockSpec((input_dim, hidden), const),          # w1: VMEM-resident
                pl.BlockSpec((1, hidden), const),                  # b1
                pl.BlockSpec((hidden, hidden), const),             # w2
                pl.BlockSpec((1, hidden), const),                  # b2
                pl.BlockSpec((hidden, out_pad), const),            # w3 (lane-padded)
                pl.BlockSpec((1, out_pad), const),                 # b3 (lane-padded)
            ],
            out_specs=pl.BlockSpec((tb, out_pad), lambda i: (i, 0)),
        ),
        compiler_params=pltpu.CompilerParams(
            dimension_semantics=("parallel",),   # megacore sharding on v7x
            vmem_limit_bytes=32 * 1024 * 1024,   # safe on 64 MiB v7x VMEM too
        ),
        cost_estimate=cost,
    )(x, w1, b1, w2, b2, w3, b3)

    # Drop batch padding and the padded softmax lanes (they are exactly 0).
    return out[:batch, :output_dim]


def init_params(key, input_dim, output_dim, hidden=64):
    """Deterministic init mimicking PyTorch nn.Linear default U[-1/sqrt(fan_in), +]."""
    ks = jax.random.split(key, 6)

    def linear(kw, kb, fan_in, fan_out):
        bound = 1.0 / np.sqrt(fan_in)
        w = jax.random.uniform(kw, (fan_in, fan_out), jnp.float32, -bound, bound)
        b = jax.random.uniform(kb, (1, fan_out), jnp.float32, -bound, bound)
        return w, b

    w1, b1 = linear(ks[0], ks[1], input_dim, hidden)
    w2, b2 = linear(ks[2], ks[3], hidden, hidden)
    w3, b3 = linear(ks[4], ks[5], hidden, output_dim)
    return {"w1": w1, "b1": b1, "w2": w2, "b2": b2, "w3": w3, "b3": b3}


def reference_forward(x, p):
    h1 = jnp.maximum(x @ p["w1"] + p["b1"], 0.0)
    h2 = jnp.maximum(h1 @ p["w2"] + p["b2"], 0.0)
    logits = h2 @ p["w3"] + p["b3"]
    return jax.nn.softmax(logits, axis=-1)


if __name__ == "__main__":
    key = jax.random.PRNGKey(0)
    k_x, k_p = jax.random.split(key)

    batch, input_dim, output_dim = 8, 16, 8
    x = jax.random.normal(k_x, (batch, input_dim), jnp.float32)
    params = init_params(k_p, input_dim, output_dim)

    out = policy_network_forward(x, params)
    out = jax.block_until_ready(out)
    assert out.shape == (batch, output_dim)

    # bf16 matmul inputs -> loosen tolerance vs f32 reference.
    ref = reference_forward(x, params)
    np.testing.assert_allclose(np.asarray(out), np.asarray(ref), rtol=2e-2, atol=2e-2)
    # Softmax rows must sum to ~1 (normalization is an exact f32 divide).
    np.testing.assert_allclose(np.asarray(out).sum(-1), np.ones(batch), atol=1e-3)

    print("KERNEL_OK")
</pallas_src>

<mosaic_0001>
module attributes {stable_mosaic.version = 11 : i64} {
  func.func @policy_net_kernel(%arg0: i32, %arg1: memref<8x16xf32, #tpu.memory_space<vmem>>, %arg2: memref<16x64xbf16, #tpu.memory_space<vmem>>, %arg3: memref<1x64xf32, #tpu.memory_space<vmem>>, %arg4: memref<64x64xbf16, #tpu.memory_space<vmem>>, %arg5: memref<1x64xf32, #tpu.memory_space<vmem>>, %arg6: memref<64x128xbf16, #tpu.memory_space<vmem>>, %arg7: memref<1x128xf32, #tpu.memory_space<vmem>>, %arg8: memref<8x128xf32, #tpu.memory_space<vmem>>) attributes {dimension_semantics = [#tpu.dimension_semantics<parallel>], iteration_bounds = array<i64: 1>, scalar_prefetch = 0 : i64, scratch_operands = 0 : i64, tpu.core_type = #tpu.core_type<tc>, window_params = [{transform_indices = @transform_0, window_bounds = array<i64: 8, 16>}, {pipeline_mode = #tpu.pipeline_mode<synchronous>, transform_indices = @transform_1, window_bounds = array<i64: 16, 64>}, {pipeline_mode = #tpu.pipeline_mode<synchronous>, transform_indices = @transform_2, window_bounds = array<i64: 1, 64>}, {pipeline_mode = #tpu.pipeline_mode<synchronous>, transform_indices = @transform_3, window_bounds = array<i64: 64, 64>}, {pipeline_mode = #tpu.pipeline_mode<synchronous>, transform_indices = @transform_4, window_bounds = array<i64: 1, 64>}, {pipeline_mode = #tpu.pipeline_mode<synchronous>, transform_indices = @transform_5, window_bounds = array<i64: 64, 128>}, {pipeline_mode = #tpu.pipeline_mode<synchronous>, transform_indices = @transform_6, window_bounds = array<i64: 1, 128>}, {transform_indices = @transform_7, window_bounds = array<i64: 8, 128>}]} {
    %c0 = arith.constant 0 : index
    %c0_0 = arith.constant 0 : index
    %0 = vector.load %arg1[%c0, %c0_0] : memref<8x16xf32, #tpu.memory_space<vmem>>, vector<8x16xf32>
    %1 = arith.truncf %0 : vector<8x16xf32> to vector<8x16xbf16>
    %c0_1 = arith.constant 0 : index
    %c0_2 = arith.constant 0 : index
    %2 = vector.load %arg2[%c0_1, %c0_2] : memref<16x64xbf16, #tpu.memory_space<vmem>>, vector<16x64xbf16>
    %cst = arith.constant dense<0.000000e+00> : vector<8x64xf32>
    %3 = tpu.matmul %1, %2, %cst {dimension_numbers = #tpu.dot_dimension_numbers<[1], [0], [0], [1], [0, 0, 1, 1], [], []>} : vector<8x16xbf16>, vector<16x64xbf16>, vector<8x64xf32> -> vector<8x64xf32>
    %c0_3 = arith.constant 0 : index
    %c0_4 = arith.constant 0 : index
    %4 = vector.load %arg3[%c0_3, %c0_4] : memref<1x64xf32, #tpu.memory_space<vmem>>, vector<1x64xf32>
    %5 = vector.broadcast %4 : vector<1x64xf32> to vector<8x64xf32>
    %6 = arith.addf %3, %5 : vector<8x64xf32>
    %cst_5 = arith.constant 0.000000e+00 : f32
    %7 = vector.broadcast %cst_5 : f32 to vector<8x64xf32>
    %8 = arith.maximumf %6, %7 : vector<8x64xf32>
    %9 = arith.truncf %8 : vector<8x64xf32> to vector<8x64xbf16>
    %c0_6 = arith.constant 0 : index
    %c0_7 = arith.constant 0 : index
    %10 = vector.load %arg4[%c0_6, %c0_7] : memref<64x64xbf16, #tpu.memory_space<vmem>>, vector<64x64xbf16>
    %cst_8 = arith.constant dense<0.000000e+00> : vector<8x64xf32>
    %11 = tpu.matmul %9, %10, %cst_8 {dimension_numbers = #tpu.dot_dimension_numbers<[1], [0], [0], [1], [0, 0, 1, 1], [], []>} : vector<8x64xbf16>, vector<64x64xbf16>, vector<8x64xf32> -> vector<8x64xf32>
    %c0_9 = arith.constant 0 : index
    %c0_10 = arith.constant 0 : index
    %12 = vector.load %arg5[%c0_9, %c0_10] : memref<1x64xf32, #tpu.memory_space<vmem>>, vector<1x64xf32>
    %13 = vector.broadcast %12 : vector<1x64xf32> to vector<8x64xf32>
    %14 = arith.addf %11, %13 : vector<8x64xf32>
    %cst_11 = arith.constant 0.000000e+00 : f32
    %15 = vector.broadcast %cst_11 : f32 to vector<8x64xf32>
    %16 = arith.maximumf %14, %15 : vector<8x64xf32>
    %17 = arith.truncf %16 : vector<8x64xf32> to vector<8x64xbf16>
    %c0_12 = arith.constant 0 : index
    %c0_13 = arith.constant 0 : index
    %18 = vector.load %arg6[%c0_12, %c0_13] : memref<64x128xbf16, #tpu.memory_space<vmem>>, vector<64x128xbf16>
    %cst_14 = arith.constant dense<0.000000e+00> : vector<8x128xf32>
    %19 = tpu.matmul %17, %18, %cst_14 {dimension_numbers = #tpu.dot_dimension_numbers<[1], [0], [0], [1], [0, 0, 1, 1], [], []>} : vector<8x64xbf16>, vector<64x128xbf16>, vector<8x128xf32> -> vector<8x128xf32>
    %c0_15 = arith.constant 0 : index
    %c0_16 = arith.constant 0 : index
    %20 = vector.load %arg7[%c0_15, %c0_16] : memref<1x128xf32, #tpu.memory_space<vmem>>, vector<1x128xf32>
    %21 = vector.broadcast %20 : vector<1x128xf32> to vector<8x128xf32>
    %22 = arith.addf %19, %21 : vector<8x128xf32>
    %cst_17 = arith.constant dense<0xFF800000> : vector<8xf32>
    %23 = vector.multi_reduction <maximumf>, %22, %cst_17 [1] : vector<8x128xf32> to vector<8xf32>
    %24 = vector.shape_cast %23 : vector<8xf32> to vector<8x1xf32>
    %25 = vector.broadcast %24 : vector<8x1xf32> to vector<8x128xf32>
    %26 = arith.subf %22, %25 : vector<8x128xf32>
    %27 = math.exp %26 : vector<8x128xf32>
    %cst_18 = arith.constant dense<0.000000e+00> : vector<8xf32>
    %28 = vector.multi_reduction <add>, %27, %cst_18 [1] : vector<8x128xf32> to vector<8xf32>
    %29 = vector.shape_cast %28 : vector<8xf32> to vector<8x1xf32>
    %30 = vector.broadcast %29 : vector<8x1xf32> to vector<8x128xf32>
    %31 = arith.divf %27, %30 : vector<8x128xf32>
    %c0_19 = arith.constant 0 : index
    %c0_20 = arith.constant 0 : index
    %32 = vector.load %arg8[%c0_19, %c0_20] : memref<8x128xf32, #tpu.memory_space<vmem>>, vector<8x128xf32>
    tpu.vector_store %arg8[%c0_19, %c0_20], %31 {strides = array<i32>} : memref<8x128xf32, #tpu.memory_space<vmem>>, vector<8x128xf32>,
    return
  }
  func.func @transform_0(%arg0: i32) -> (i32, i32) {
    %c0_i32 = arith.constant 0 : i32
    %c0_i32_0 = arith.constant 0 : i32
    return %arg0, %c0_i32 : i32, i32
  }
  func.func @transform_1(%arg0: i32) -> (i32, i32) {
    %c0_i32 = arith.constant 0 : i32
    %c0_i32_0 = arith.constant 0 : i32
    %c0_i32_1 = arith.constant 0 : i32
    return %c0_i32, %c0_i32_0 : i32, i32
  }
  func.func @transform_2(%arg0: i32) -> (i32, i32) {
    %c0_i32 = arith.constant 0 : i32
    %c0_i32_0 = arith.constant 0 : i32
    %c0_i32_1 = arith.constant 0 : i32
    return %c0_i32, %c0_i32_0 : i32, i32
  }
  func.func @transform_3(%arg0: i32) -> (i32, i32) {
    %c0_i32 = arith.constant 0 : i32
    %c0_i32_0 = arith.constant 0 : i32
    %c0_i32_1 = arith.constant 0 : i32
    return %c0_i32, %c0_i32_0 : i32, i32
  }
  func.func @transform_4(%arg0: i32) -> (i32, i32) {
    %c0_i32 = arith.constant 0 : i32
    %c0_i32_0 = arith.constant 0 : i32
    %c0_i32_1 = arith.constant 0 : i32
    return %c0_i32, %c0_i32_0 : i32, i32
  }
  func.func @transform_5(%arg0: i32) -> (i32, i32) {
    %c0_i32 = arith.constant 0 : i32
    %c0_i32_0 = arith.constant 0 : i32
    %c0_i32_1 = arith.constant 0 : i32
    return %c0_i32, %c0_i32_0 : i32, i32
  }
  func.func @transform_6(%arg0: i32) -> (i32, i32) {
    %c0_i32 = arith.constant 0 : i32
    %c0_i32_0 = arith.constant 0 : i32
    %c0_i32_1 = arith.constant 0 : i32
    return %c0_i32, %c0_i32_0 : i32, i32
  }
  func.func @transform_7(%arg0: i32) -> (i32, i32) {
    %c0_i32 = arith.constant 0 : i32
    %c0_i32_0 = arith.constant 0 : i32
    return %arg0, %c0_i32 : i32, i32
  }
}

</mosaic_0001>

<bundles_post_ra>
// kernel: policy_network_forward.1
= control target key start
LH: loop header
LB: loop body
LE: loop exit
PB: predicated region body
PF: predicated region fallthrough
CT: control target
= control target key end

     0   :  { %v377_v1 = vmov 0.0   ;;  %vm45_vm0 = vcmask 130048   ;;  %vm378_vm1 = vmmov 0   ;;  %s464_s0 = inlined_call_operand.vmem [shape: f32[8,16], index: 0, kind: input, shape index: {}]   ;;  %s465_s1 = inlined_call_operand.vmem [shape: bf16[16,64], index: 1, kind: input, shape index: {}]   ;;  %s466_s2 = inlined_call_operand.vmem [shape: f32[1,64], index: 2, kind: input, shape index: {}]   ;;  %s467_s3 = inlined_call_operand.vmem [shape: bf16[64,64], index: 3, kind: input, shape index: {}]   ;;  %s468_s4 = inlined_call_operand.vmem [shape: f32[1,64], index: 4, kind: input, shape index: {}]   ;;  %s469_s5 = inlined_call_operand.vmem [shape: bf16[64,128], index: 5, kind: input, shape index: {}]   ;;  %s470_s6 = inlined_call_operand.vmem [shape: f32[1,128], index: 6, kind: input, shape index: {}]   ;;  %s471_s7 = inlined_call_operand.hbm [shape: f32[8,128], index: 7, kind: output, shape index: {}]  }
   0x1   :  { %v342_v0 = vld [vmem:[%s465_s1] sm:$0xff]   ;;  %309 = vmatprep.subr.bf16.mxu0 %v377_v1  ;;  %315 = vmatprep.subr.bf16.mxu1 %v377_v1  ;;  %v343_v3 = vld [vmem:[%s467_s3 + $0x18] sm:$0xff]   ;;  %v344_v5 = vld [vmem:[%s467_s3 + $0x10] sm:$0xff]  }
   0x2   :  { %v28_v2 = vld [vmem:[%s464_s0] sm:$0xff]  ;;  %310 = vmatpush3.bf16.msra.mxu0 %v342_v0  ;;  %311 = vmatprep.mubr.msk.bf16.mxu0 %vm378_vm1, %v377_v1 }
   0x3   :  { %v29_v4 = vpack.c.bf16 %v28_v2, %v28_v2  ;;  %316 = vmatpush3.bf16.msra.mxu1 %v343_v3  ;;  %323 = vmatprep.mubr.msk.bf16.mxu1 %vm378_vm1, %v377_v1 }
   0x4   :  { %317 = vmatprep.subr.bf16.mxu1 %v377_v1  ;;  %327 = vmatprep.subr.bf16.mxu0 %v377_v1 }
   0x5   :  { %312 = vmatmul.mubr.msk.bf16.vlgmr.msra.gmra.mxu0 %vm45_vm0, %v29_v4 }
   0x6   :  { %335 = vmatprep.mubr.msk.bf16.mxu0 %vm378_vm1, %v377_v1 }
   0x7   :  { %318 = vmatpush3.bf16.msra.mxu1 %v344_v5 }
   0x8   :  { %12 = vsyncpa [#allocation3], 0  ;;  %319 = vmatprep.subr.bf16.mxu1 %v377_v1  ;;  %v345_v6 = vld [vmem:[%s467_s3 + $0x8] sm:$0xff]   ;;  %v346_v7 = vld [vmem:[%s467_s3] sm:$0xff]   ;;  %vm130_vm2 = vcmask 523264  }
   0x9   :  { %v347_v8 = vld [vmem:[%s469_s5 + $0x18] sm:$0xff]   ;;  %v348_v9 = vld [vmem:[%s469_s5 + $0x10] sm:$0xff]   ;;  %v282_v10 = vld [vmem:[%s466_s2] ss:$0 sm:$0xff] }
   0xa   :  { %328 = vmatpush3.bf16.msra.mxu0 %v347_v8  ;;  %v349_v18 = vld [vmem:[%s469_s5 + $0x8] sm:$0xff]   ;;  %v350_v19 = vld [vmem:[%s469_s5] sm:$0xff]  }
   0xb   :  { %320 = vmatpush3.bf16.msra.mxu1 %v345_v6  ;;  %329 = vmatprep.subr.bf16.mxu0 %v377_v1  ;;  %v285_v20 = vld [vmem:[%s468_s4] ss:$0 sm:$0xff]  ;;  %s379_s4 = smov [#allocation2]  }
   0xc   :  { %321 = vmatprep.subr.bf16.mxu1 %v377_v1  ;;  %v291_v28 = vld [vmem:[%s470_s6] ss:$0 sm:$0xff]  ;;  %s274_s5 = sshll.u32 %s379_s4, 4  ;;  %s275_s5 = int_to_ptr.vmem [resolvable:$true] %s274_s5 }
   0xd   :  { %s355_s6 = scalar_lea.vmem %s275_s5, 128  ;;  %p360_p1 = scmp.lt.s32.totalorder %s275_s5, %s275_s5 }
   0xe   :  { %330 = vmatpush3.bf16.msra.mxu0 %v348_v9  ;;  %p356_p0 = scmp.ne.s32.totalorder %s275_s5, %s355_s6  ;;  %p361_p2 = scmp.lt.s32.totalorder %s355_s6, %s355_s6 }
   0xf   :  { %322 = vmatpush3.bf16.msra.mxu1 %v346_v7  ;;  %331 = vmatprep.subr.bf16.mxu0 %v377_v1 }
  0x10   :  { %p362_p3 = por %p361_p2, %p360_p1 }
  0x12   :  { %332 = vmatpush3.bf16.msra.mxu0 %v349_v18  ;;  %p363_p4 = pnand %p362_p3, %p356_p0 }
  0x13   :  { %333 = vmatprep.subr.bf16.mxu0 %v377_v1 }
  0x16   :  { %334 = vmatpush3.bf16.msra.mxu0 %v350_v19 }
  0xc5   :  { %v83_v11 = vpop.f32.mrf.mxu0 }
  0xc6   :  { %v84_v12 = vadd.f32 %v282_v10, %v83_v11 }
  0xc7   :  { %v313_v13 = vpop.f32.mrf.mxu0 }
  0xc8   :  { %v89_v14 = vmax.f32 %v84_v12, 0.0 }
  0xc9   :  { %v86_v15 = vpop.f32.mrf.mxu0 }
  0xca   :  { %v90_v16 = vpack.c.bf16 %v89_v14, %v89_v14 }
  0xcb   :  { %v314_v17 = vpop.f32.mrf.mxu0 }
  0xcc   :  { %324 = vmatmul.mubr.msk.bf16.vlgmr.msra.gmra.mxu1 %vm130_vm2, %v90_v16 }
 0x18c   :  { %v168_v21 = vpop.f32.mrf.mxu1 }
 0x18d   :  { %v169_v22 = vadd.f32 %v285_v20, %v168_v21 }
 0x18e   :  { %v325_v23 = vpop.f32.mrf.mxu1 }
 0x18f   :  { %v174_v24 = vmax.f32 %v169_v22, 0.0 }
 0x190   :  { %v171_v25 = vpop.f32.mrf.mxu1 }
 0x191   :  { %v175_v26 = vpack.c.bf16 %v174_v24, %v174_v24 }
 0x192   :  { %v326_v27 = vpop.f32.mrf.mxu1 }
 0x193   :  { %336 = vmatmul.mubr.msk.bf16.vlgmr.msra.gmra.mxu0 %vm130_vm2, %v175_v26 }
 0x253   :  { %v252_v29 = vpop.f32.mrf.mxu0 }
 0x254   :  { %v253_v30 = vadd.f32 %v291_v28, %v252_v29 }
 0x255   :  { %v337_v31 = vpop.f32.mrf.mxu0 }
 0x256   :  { %258 = vmax.xlane.f32.xlu0 %v253_v30 }
 0x257   :  { %v255_v32 = vpop.f32.mrf.mxu0 }
 0x259   :  { %v338_v33 = vpop.f32.mrf.mxu0 }
 0x2df   :  { %v259_v34 = vpop.xlane.xlu0 %258 }
 0x2e0   :  { %v260_v35 = vsub.f32 %v253_v30, %v259_v34 }
 0x2e2   :  { %v261_v36 = vmul.f32 1.442695, %v260_v35 }
 0x2e4   :  { %351 = vpow2.f32 %v261_v36 }
 0x2f1   :  { %v352_v37 = vpop.eup %351 }
 0x2f2   :  { %263 = vadd.xlane.f32.xlu0 %v352_v37 }
 0x37b   :  { %v264_v38 = vpop.xlane.xlu0 %263 }
 0x37c   :  { %353 = vrcp.f32 %v264_v38 }
 0x389   :  { %v354_v39 = vpop.eup %353 }
 0x38a   :  { %v266_v40 = vmul.f32 %v354_v39, %v352_v37 }
 0x38c   :  { %267 = vst [vmem:[#allocation2] sm:$0xff] %v266_v40 }
 0x38d   :  { %366 = shalt.err (!%p363_p4)
}
 0x38e   :  { %277 = dma.vmem_to_hbm [thread:$0]  %s275_s5, 128, %s471_s7, [#allocation3]  }
 0x38f   :  { %375 = dma.done.wait [#allocation3], 128  }
 0x390   :  { %376 = vsyncadd [#allocation3], 4294967168 }
 0x391   :  { %281 = vsyncpa [#allocation3], 1 }

</bundles_post_ra>
